<compile_context>
chip_gen: v5e
topology: v5e:2x2
jax: 0.10.0
libtpu: 0.0.40
codegen_flags: <defaults>
</compile_context>

<pallas_src>
import math

import jax
import jax.numpy as jnp
from jax.experimental import pallas as pl
from jax.experimental.pallas import tpu as pltpu


def _copy_kernel(x_ref, o_ref):
    # Identity copy of the current (tile_rows, lanes) slab tile.
    o_ref[...] = x_ref[...]


_LANE_CANDIDATES = (4096, 2048, 1024, 512, 256, 128)
_TARGET_BLOCK_BYTES = 4 * 1024 * 1024   # 4 MiB blocks: 4 bufs (in+out, double-buffered)
                                        # = 16 MiB, safe even on v7x's 64 MiB VMEM.
_VMEM_LIMIT_BYTES = 32 * 1024 * 1024    # raise v5e's 16 MiB default scoped VMEM.


def flatten_forward(x):
    """Pallas equivalent of Flatten.forward: (N, ...) -> (N, prod(rest))."""
    n = x.shape[0]
    feat = math.prod(x.shape[1:]) if x.ndim > 1 else 1
    total = n * feat

    # Metadata-only path: flatten on a contiguous buffer needs no data movement.
    # Also used when the total element count is not lane-alignable (rare), so we
    # never fall back to a single block larger than VMEM.
    if total == 0 or total % 128 != 0:
        return jnp.reshape(x, (n, feat))

    # Re-present the contiguous buffer as a (rows, lanes) slab, lanes a large
    # multiple of 128 that divides the total; prefer a choice leaving >=8 rows
    # so blocks are sublane-dense as well.
    lanes = None
    for cand in _LANE_CANDIDATES:
        if total % cand == 0 and (total // cand) >= 8:
            lanes = cand
            break
    if lanes is None:
        for cand in _LANE_CANDIDATES:
            if total % cand == 0:
                lanes = cand
                break
    rows = total // lanes

    itemsize = jnp.dtype(x.dtype).itemsize
    sub = max(8, 32 // itemsize)            # sublane granularity: f32->8, bf16->16, i8->32
    rows_per_block = max(1, _TARGET_BLOCK_BYTES // (lanes * itemsize))

    if rows < sub:
        tile_rows = rows                    # full-dim exception to the (8,128) rule
    else:
        # MiB-scale blocks, but guarantee >=2 grid steps when there is enough
        # data so the "parallel" axis can shard across both v7x TensorCores.
        tile_rows = min(rows // 2 if rows >= 2 * sub else rows, rows_per_block)
        tile_rows = max(sub, (tile_rows // sub) * sub)

    grid = (pl.cdiv(rows, tile_rows),)      # Pallas masks the partial last block.
    slab = jnp.reshape(x, (rows, lanes))    # metadata-only re-view of the buffer

    out2d = pl.pallas_call(
        _copy_kernel,
        out_shape=jax.ShapeDtypeStruct((rows, lanes), x.dtype),
        grid_spec=pltpu.PrefetchScalarGridSpec(
            num_scalar_prefetch=0,
            grid=grid,
            in_specs=[pl.BlockSpec((tile_rows, lanes), lambda i: (i, 0))],
            out_specs=pl.BlockSpec((tile_rows, lanes), lambda i: (i, 0)),
        ),
        compiler_params=pltpu.CompilerParams(
            dimension_semantics=("parallel",),
            vmem_limit_bytes=_VMEM_LIMIT_BYTES,
        ),
        # Alias the input buffer onto the output so XLA can donate it instead
        # of allocating a second full-size HBM tensor for a pure identity copy.
        input_output_aliases={0: 0},
    )(slab)

    return jnp.reshape(out2d, (n, feat))


if __name__ == "__main__":
    key = jax.random.PRNGKey(0)
    # Small NCHW input consistent with a conv-net feature map.
    x = jax.random.normal(key, (2, 4, 16, 16), dtype=jnp.float32)

    y = jax.jit(flatten_forward)(x)
    y = jax.block_until_ready(y)

    # Reference: plain JAX reshape (semantically identical to torch .view).
    y_ref = jnp.reshape(x, (x.shape[0], -1))
    assert y.shape == (2, 4 * 16 * 16), y.shape
    assert y.dtype == x.dtype
    assert bool(jnp.array_equal(y, y_ref))

    print("KERNEL_OK")
</pallas_src>

<mosaic_0001>
module attributes {stable_mosaic.version = 11 : i64} {
  func.func @_copy_kernel(%arg0: i32, %arg1: memref<8x256xf32, #tpu.memory_space<vmem>>, %arg2: memref<8x256xf32, #tpu.memory_space<vmem>>) attributes {dimension_semantics = [#tpu.dimension_semantics<parallel>], iteration_bounds = array<i64: 1>, scalar_prefetch = 0 : i64, scratch_operands = 0 : i64, tpu.core_type = #tpu.core_type<tc>, window_params = [{transform_indices = @transform_0, window_bounds = array<i64: 8, 256>}, {transform_indices = @transform_1, window_bounds = array<i64: 8, 256>}]} {
    %c0 = arith.constant 0 : index
    %c0_0 = arith.constant 0 : index
    %0 = vector.load %arg1[%c0, %c0_0] : memref<8x256xf32, #tpu.memory_space<vmem>>, vector<8x256xf32>
    %c0_1 = arith.constant 0 : index
    %c0_2 = arith.constant 0 : index
    %1 = vector.load %arg2[%c0_1, %c0_2] : memref<8x256xf32, #tpu.memory_space<vmem>>, vector<8x256xf32>
    tpu.vector_store %arg2[%c0_1, %c0_2], %0 {strides = array<i32>} : memref<8x256xf32, #tpu.memory_space<vmem>>, vector<8x256xf32>,
    return
  }
  func.func @transform_0(%arg0: i32) -> (i32, i32) {
    %c0_i32 = arith.constant 0 : i32
    %c0_i32_0 = arith.constant 0 : i32
    return %arg0, %c0_i32 : i32, i32
  }
  func.func @transform_1(%arg0: i32) -> (i32, i32) {
    %c0_i32 = arith.constant 0 : i32
    %c0_i32_0 = arith.constant 0 : i32
    return %arg0, %c0_i32 : i32, i32
  }
}

</mosaic_0001>

<bundles_post_ra>
// kernel: flatten_forward.1
= control target key start
LH: loop header
LB: loop body
LE: loop exit
PB: predicated region body
PF: predicated region fallthrough
CT: control target
= control target key end

     0   :  { %s38_s0 = inlined_call_operand.vmem [shape: f32[8,256], index: 0, kind: input, shape index: {}, may-alias: {0,1}]   ;;  %s39_s1 = inlined_call_operand.vmem [shape: f32[8,256], index: 1, kind: output, shape index: {}, may-alias: {0,1}]  }
   0x1   :  { %v8_v0 = vld [vmem:[%s38_s0] sm:$0xff]  ;;  %v9_v1 = vld [vmem:[%s38_s0 + $0x8] sm:$0xff] }
   0x2   :  { %10 = vst [vmem:[%s39_s1] sm:$0xff] %v8_v0 }
   0x3   :  { %11 = vst [vmem:[%s39_s1 + $0x8] sm:$0xff] %v9_v1 }

</bundles_post_ra>
